<compile_context>
chip_gen: v6e
topology: v6e:2x2x1
jax: 0.10.0
libtpu: 0.0.40
codegen_flags: <defaults>
</compile_context>

<pallas_src>
import functools

import jax
import jax.numpy as jnp
from jax import lax
from jax.experimental import pallas as pl
from jax.experimental.pallas import tpu as pltpu


# ---------------------------------------------------------------------------
# Path A: gridless, whole problem resident in VMEM (small M)
# ---------------------------------------------------------------------------
def _kmeans_kernel(x_ref, labels_ref, *, n_clusters, max_iter):
    """Runs `max_iter` KMeans (Lloyd) iterations entirely in VMEM.

    x_ref:      (M, N) float32  -- samples (wrapper already casts to f32)
    labels_ref: (1, M) int32    -- cluster assignment per sample (lane-dense)
    """
    X = x_ref[...]                                            # (M, N) f32
    M, N = X.shape
    K = n_clusters

    # ---- loop invariants (hoisted: JAX does not CSE these inside loops) ----
    # Single augmented X copy: [X | 1] feeds the fused sums+counts matmul.
    ones_col = jnp.ones((M, 1), jnp.float32)
    x_sum = jnp.concatenate([X, ones_col], axis=1)            # (M, N+1)
    cluster_ids = lax.broadcasted_iota(jnp.int32, (K, M), 0)  # (K, M)

    dn_bt = (((1,), (1,)), ((), ()))   # A @ B^T   (contract the feature axis)
    dn_ab = (((1,), (0,)), ((), ()))   # A @ B     (contract the sample axis)

    def one_iter(_, carry):
        centroids, _ = carry                                  # (K, N), (1, M)

        # --- assignment: scores[k, m] = ||c_k||^2 - 2 x_m . c_k -------------
        # Per review: no per-iteration lane concat; scale the tiny (K, N)
        # centroid block by -2, do the matmul at the natural N width, then add
        # ||c||^2 as a broadcast on the VPU (which has slack here).
        c_norm = jnp.sum(centroids * centroids, axis=1, keepdims=True)   # (K, 1)
        c_scaled = centroids * -2.0                                      # (K, N)
        scores = lax.dot_general(c_scaled, X, dimension_numbers=dn_bt,
                                 preferred_element_type=jnp.float32)     # (K, M)
        scores = scores + c_norm                                         # VPU bcast

        # argmin over the K cluster rows, unrolled (K is small & static).
        # Strict `<` keeps the first index on ties, matching torch.argmin.
        # TODO(synk): empty-cluster NaN centroids make NaN tie-breaking vs
        # torch.argmin unspecified; does not occur for non-degenerate inputs.
        # (For K >~ 8, restructure as a sublane min-reduce + iota pick instead
        # of K sublane extracts.)
        best_val = scores[0:1, :]                                        # (1, M)
        labels = jnp.zeros((1, M), jnp.int32)
        for k in range(1, K):
            v = scores[k:k + 1, :]
            better = v < best_val
            best_val = jnp.where(better, v, best_val)
            labels = jnp.where(better, jnp.int32(k), labels)

        # --- centroid update: sums AND counts in one MXU matmul -------------
        mask = (labels == cluster_ids).astype(jnp.float32)               # (K, M)
        sums_counts = lax.dot_general(mask, x_sum, dimension_numbers=dn_ab,
                                      preferred_element_type=jnp.float32)  # (K, N+1)
        sums = sums_counts[:, :N]                                        # (K, N)
        counts = sums_counts[:, N:]                                      # (K, 1)
        # empty cluster -> 0/0 -> NaN, matching torch's mean of an empty slice
        new_centroids = sums / counts
        return new_centroids, labels

    init = (X[:K, :], jnp.zeros((1, M), jnp.int32))   # centroids = X[:K].clone()
    # Unroll only short static trip counts (per review); long loops would
    # multiply the compare/select chain and pressure the 64-vreg file.
    _, labels = lax.fori_loop(0, max_iter, one_iter, init,
                              unroll=(max_iter <= 8))
    labels_ref[...] = labels


def _kmeans_labels_gridless(X, n_clusters, max_iter):
    M, N = X.shape
    kernel = functools.partial(
        _kmeans_kernel, n_clusters=n_clusters, max_iter=max_iter
    )
    labels_row = pl.pallas_call(
        kernel,
        out_shape=jax.ShapeDtypeStruct((1, M), jnp.int32),
        in_specs=[pl.BlockSpec(memory_space=pltpu.MemorySpace.VMEM)],
        out_specs=pl.BlockSpec(memory_space=pltpu.MemorySpace.VMEM),
        compiler_params=pltpu.CompilerParams(
            # Modest, generation-safe budget; large M goes to the tiled path
            # below instead of raising this limit.
            vmem_limit_bytes=32 * 1024 * 1024,
        ),
    )(X.astype(jnp.float32))
    return labels_row[0, :]


# ---------------------------------------------------------------------------
# Path B: M-tiled, pipelined path (large M) -- one pallas_call per iteration
# ---------------------------------------------------------------------------
def _kmeans_assign_kernel(c_aug_ref, x_aug_ref, labels_ref, partial_ref, *,
                          n_clusters):
    """One M-tile of one Lloyd iteration.

    c_aug_ref:   (K, N+1)  -- [-2*centroids | ||c||^2]   (built per iter in XLA)
    x_aug_ref:   (TM, N+1) -- [X_tile | 1]               (built once in XLA)
    labels_ref:  (1, TM)   -- lane-dense labels tile
    partial_ref: (1, K, N+1) -- per-tile [cluster feature sums | counts]
    """
    c_aug = c_aug_ref[...]
    x_aug = x_aug_ref[...]
    K = n_clusters
    TM = x_aug.shape[0]
    NP1 = x_aug.shape[1]

    dn_bt = (((1,), (1,)), ((), ()))   # contract the (N+1) feature axis
    dn_ab = (((1,), (0,)), ((), ()))   # contract the TM sample axis

    # scores[k, m] = ||c_k||^2 - 2 x_m . c_k   (fused via the ones column)
    scores = lax.dot_general(c_aug, x_aug, dimension_numbers=dn_bt,
                             preferred_element_type=jnp.float32)   # (K, TM)

    best_val = scores[0:1, :]
    labels = jnp.zeros((1, TM), jnp.int32)
    for k in range(1, K):
        v = scores[k:k + 1, :]
        better = v < best_val
        best_val = jnp.where(better, v, best_val)
        labels = jnp.where(better, jnp.int32(k), labels)
    labels_ref[...] = labels

    cluster_ids = lax.broadcasted_iota(jnp.int32, (K, TM), 0)
    mask = (labels == cluster_ids).astype(jnp.float32)              # (K, TM)
    sums_counts = lax.dot_general(mask, x_aug, dimension_numbers=dn_ab,
                                  preferred_element_type=jnp.float32)  # (K, N+1)
    partial_ref[...] = sums_counts.reshape(1, K, NP1)


def _kmeans_labels_tiled(X, n_clusters, max_iter, *, tile_m=128):
    M, N = X.shape
    K = n_clusters
    assert M % tile_m == 0, "tiled path requires M % tile_m == 0"
    n_tiles = M // tile_m

    Xf = X.astype(jnp.float32)
    # Single augmented X copy, built ONCE for all iterations.
    x_aug = jnp.concatenate([Xf, jnp.ones((M, 1), jnp.float32)], axis=1)  # (M, N+1)

    kernel = functools.partial(_kmeans_assign_kernel, n_clusters=K)
    assign_call = pl.pallas_call(
        kernel,
        out_shape=(jax.ShapeDtypeStruct((1, M), jnp.int32),
                   jax.ShapeDtypeStruct((n_tiles, K, N + 1), jnp.float32)),
        grid=(n_tiles,),
        in_specs=[
            pl.BlockSpec((K, N + 1), lambda i: (0, 0)),       # centroids: whole
            pl.BlockSpec((tile_m, N + 1), lambda i: (i, 0)),  # X tile
        ],
        out_specs=(
            pl.BlockSpec((1, tile_m), lambda i: (0, i)),        # lane-dense labels
            pl.BlockSpec((1, K, N + 1), lambda i: (i, 0, 0)),   # per-tile partials
        ),
        compiler_params=pltpu.CompilerParams(
            # "parallel": per-tile partials are independent (combined in XLA
            # below), so v7x's 2 TensorCores can split the M axis.
            dimension_semantics=("parallel",),
            # Tiles here are tiny; when scaling tile_m, size against the
            # per-generation VMEM budget (bigger on v5e/v6e 128 MiB, cap with
            # headroom on v7x 64 MiB; BlockSpec double-buffers each input).
        ),
    )

    centroids = Xf[:K, :]                              # centroids = X[:K].clone()
    labels_row = None
    for _ in range(max_iter):
        c_norm = jnp.sum(centroids * centroids, axis=1, keepdims=True)     # (K, 1)
        c_aug = jnp.concatenate([centroids * -2.0, c_norm], axis=1)        # (K, N+1)
        labels_row, partials = assign_call(c_aug, x_aug)
        sums_counts = partials.sum(axis=0)                                 # (K, N+1)
        # empty cluster -> 0/0 -> NaN, matching torch's mean of an empty slice
        centroids = sums_counts[:, :N] / sums_counts[:, N:]
    return labels_row[0, :]


# ---------------------------------------------------------------------------
# Public wrapper (dispatch) and pure-JAX reference
# ---------------------------------------------------------------------------
def kmeans_labels(X, n_clusters, max_iter, *, tile_m=128):
    """Returns per-sample cluster labels, shape (M,), int32.

    (torch.argmin returns int64; int32 used here -- values are identical.)
    """
    M, _ = X.shape
    if M % tile_m == 0 and M // tile_m >= 2:
        return _kmeans_labels_tiled(X, n_clusters, max_iter, tile_m=tile_m)
    return _kmeans_labels_gridless(X, n_clusters, max_iter)


def kmeans_ref(X, n_clusters, max_iter):
    """Pure-JAX reference mirroring the torch module semantics (direct
    per-cluster sqrt distance, torch-style argmin and mean update)."""
    centroids = X[:n_clusters, :]
    labels = jnp.zeros((X.shape[0],), jnp.int32)
    for _ in range(max_iter):
        dist = jnp.stack(
            [
                jnp.sqrt(jnp.sum((X - centroids[k, :]) ** 2, axis=1))
                for k in range(n_clusters)
            ],
            axis=1,
        )
        labels = jnp.argmin(dist, axis=1).astype(jnp.int32)
        mask = (labels[:, None] == jnp.arange(n_clusters)[None, :]).astype(X.dtype)
        counts = mask.sum(axis=0)
        centroids = (mask.T @ X) / counts[:, None]
    return labels


if __name__ == "__main__":
    K, ITERS = 4, 5        # n_clusters, max_iter (module __init__ args)

    # --- small problem: gridless, VMEM-resident path -----------------------
    M_small, N = 32, 8
    X_small = jax.random.normal(jax.random.PRNGKey(0), (M_small, N),
                                dtype=jnp.float32)
    labels_small = jax.block_until_ready(
        kmeans_labels(X_small, n_clusters=K, max_iter=ITERS))
    ref_small = kmeans_ref(X_small, K, ITERS)
    assert labels_small.shape == (M_small,)
    assert labels_small.dtype == jnp.int32
    assert bool(jnp.all(labels_small == ref_small)), "small-path labels mismatch"

    # --- larger problem: M-tiled, pipelined path ----------------------------
    # Four well-separated blobs, interleaved so X[:4] covers all blobs
    # (deterministic; avoids empty clusters / near-tie label ambiguity).
    M_big, TM = 512, 128
    centers = 10.0 * jnp.eye(K, N, dtype=jnp.float32)                  # (K, N)
    noise = 0.1 * jax.random.normal(jax.random.PRNGKey(1),
                                    (M_big // K, K, N), dtype=jnp.float32)
    X_big = (centers[None, :, :] + noise).reshape(M_big, N)
    labels_big = jax.block_until_ready(
        kmeans_labels(X_big, n_clusters=K, max_iter=ITERS, tile_m=TM))
    ref_big = kmeans_ref(X_big, K, ITERS)
    assert labels_big.shape == (M_big,)
    assert labels_big.dtype == jnp.int32
    assert bool(jnp.all(labels_big == ref_big)), "tiled-path labels mismatch"

    print("KERNEL_OK")
</pallas_src>

<mosaic_0001>
module attributes {stable_mosaic.version = 11 : i64} {
  func.func @_kmeans_kernel(%arg0: memref<32x8xf32, #tpu.memory_space<vmem>>, %arg1: memref<1x32xi32, #tpu.memory_space<vmem>>) attributes {dimension_semantics = [], scalar_prefetch = 0 : i64, scratch_operands = 0 : i64, tpu.core_type = #tpu.core_type<tc>} {
    %c0 = arith.constant 0 : index
    %c0_0 = arith.constant 0 : index
    %0 = vector.load %arg0[%c0, %c0_0] : memref<32x8xf32, #tpu.memory_space<vmem>>, vector<32x8xf32>
    %cst = arith.constant 1.000000e+00 : f32
    %1 = vector.broadcast %cst : f32 to vector<32x1xf32>
    %2 = tpu.concatenate %0, %1 in 1 : vector<32x8xf32>, vector<32x1xf32> -> vector<32x9xf32>
    %3 = tpu.iota {dimensions = array<i32: 0>} : vector<4x32xi32>
    %4 = vector.extract_strided_slice %0 {offsets = [0, 0], sizes = [4, 8], strides = [1, 1]} : vector<32x8xf32> to vector<4x8xf32>
    %c0_i32 = arith.constant 0 : i32
    %5 = vector.broadcast %c0_i32 : i32 to vector<1x32xi32>
    %c0_i32_1 = arith.constant 0 : i32
    %6 = arith.mulf %4, %4 : vector<4x8xf32>
    %cst_2 = arith.constant dense<0.000000e+00> : vector<4xf32>
    %7 = vector.multi_reduction <add>, %6, %cst_2 [1] : vector<4x8xf32> to vector<4xf32>
    %8 = vector.shape_cast %7 : vector<4xf32> to vector<4x1xf32>
    %cst_3 = arith.constant -2.000000e+00 : f32
    %9 = vector.broadcast %cst_3 : f32 to vector<4x8xf32>
    %10 = arith.mulf %4, %9 : vector<4x8xf32>
    %cst_4 = arith.constant dense<0.000000e+00> : vector<4x32xf32>
    %11 = tpu.matmul %10, %0, %cst_4 {dimension_numbers = #tpu.dot_dimension_numbers<[1], [1], [0], [0], [0, 0, 1, 0], [], []>} : vector<4x8xf32>, vector<32x8xf32>, vector<4x32xf32> -> vector<4x32xf32>
    %12 = vector.broadcast %8 : vector<4x1xf32> to vector<4x32xf32>
    %13 = arith.addf %11, %12 : vector<4x32xf32>
    %14 = vector.extract_strided_slice %13 {offsets = [0, 0], sizes = [1, 32], strides = [1, 1]} : vector<4x32xf32> to vector<1x32xf32>
    %c0_i32_5 = arith.constant 0 : i32
    %15 = vector.broadcast %c0_i32_5 : i32 to vector<1x32xi32>
    %16 = vector.extract_strided_slice %13 {offsets = [1, 0], sizes = [1, 32], strides = [1, 1]} : vector<4x32xf32> to vector<1x32xf32>
    %17 = arith.cmpf olt, %16, %14 : vector<1x32xf32>
    %18 = arith.select %17, %16, %14 : vector<1x32xi1>, vector<1x32xf32>
    %c1_i32 = arith.constant 1 : i32
    %19 = vector.broadcast %c1_i32 : i32 to vector<1x32xi32>
    %20 = arith.select %17, %19, %15 : vector<1x32xi1>, vector<1x32xi32>
    %21 = vector.extract_strided_slice %13 {offsets = [2, 0], sizes = [1, 32], strides = [1, 1]} : vector<4x32xf32> to vector<1x32xf32>
    %22 = arith.cmpf olt, %21, %18 : vector<1x32xf32>
    %23 = arith.select %22, %21, %18 : vector<1x32xi1>, vector<1x32xf32>
    %c2_i32 = arith.constant 2 : i32
    %24 = vector.broadcast %c2_i32 : i32 to vector<1x32xi32>
    %25 = arith.select %22, %24, %20 : vector<1x32xi1>, vector<1x32xi32>
    %26 = vector.extract_strided_slice %13 {offsets = [3, 0], sizes = [1, 32], strides = [1, 1]} : vector<4x32xf32> to vector<1x32xf32>
    %27 = arith.cmpf olt, %26, %23 : vector<1x32xf32>
    %c3_i32 = arith.constant 3 : i32
    %28 = vector.broadcast %c3_i32 : i32 to vector<1x32xi32>
    %29 = arith.select %27, %28, %25 : vector<1x32xi1>, vector<1x32xi32>
    %30 = vector.broadcast %29 : vector<1x32xi32> to vector<4x32xi32>
    %31 = arith.cmpi eq, %30, %3 : vector<4x32xi32>
    %32 = arith.extui %31 : vector<4x32xi1> to vector<4x32xi32>
    %33 = arith.sitofp %32 : vector<4x32xi32> to vector<4x32xf32>
    %cst_6 = arith.constant dense<0.000000e+00> : vector<4x9xf32>
    %34 = tpu.matmul %33, %2, %cst_6 {dimension_numbers = #tpu.dot_dimension_numbers<[1], [0], [0], [1], [0, 0, 1, 1], [], []>} : vector<4x32xf32>, vector<32x9xf32>, vector<4x9xf32> -> vector<4x9xf32>
    %35 = vector.extract_strided_slice %34 {offsets = [0, 0], sizes = [4, 8], strides = [1, 1]} : vector<4x9xf32> to vector<4x8xf32>
    %36 = vector.extract_strided_slice %34 {offsets = [0, 8], sizes = [4, 1], strides = [1, 1]} : vector<4x9xf32> to vector<4x1xf32>
    %37 = vector.broadcast %36 : vector<4x1xf32> to vector<4x8xf32>
    %38 = arith.divf %35, %37 : vector<4x8xf32>
    %c1_i32_7 = arith.constant 1 : i32
    %39 = arith.mulf %38, %38 : vector<4x8xf32>
    %cst_8 = arith.constant dense<0.000000e+00> : vector<4xf32>
    %40 = vector.multi_reduction <add>, %39, %cst_8 [1] : vector<4x8xf32> to vector<4xf32>
    %41 = vector.shape_cast %40 : vector<4xf32> to vector<4x1xf32>
    %cst_9 = arith.constant -2.000000e+00 : f32
    %42 = vector.broadcast %cst_9 : f32 to vector<4x8xf32>
    %43 = arith.mulf %38, %42 : vector<4x8xf32>
    %cst_10 = arith.constant dense<0.000000e+00> : vector<4x32xf32>
    %44 = tpu.matmul %43, %0, %cst_10 {dimension_numbers = #tpu.dot_dimension_numbers<[1], [1], [0], [0], [0, 0, 1, 0], [], []>} : vector<4x8xf32>, vector<32x8xf32>, vector<4x32xf32> -> vector<4x32xf32>
    %45 = vector.broadcast %41 : vector<4x1xf32> to vector<4x32xf32>
    %46 = arith.addf %44, %45 : vector<4x32xf32>
    %47 = vector.extract_strided_slice %46 {offsets = [0, 0], sizes = [1, 32], strides = [1, 1]} : vector<4x32xf32> to vector<1x32xf32>
    %c0_i32_11 = arith.constant 0 : i32
    %48 = vector.broadcast %c0_i32_11 : i32 to vector<1x32xi32>
    %49 = vector.extract_strided_slice %46 {offsets = [1, 0], sizes = [1, 32], strides = [1, 1]} : vector<4x32xf32> to vector<1x32xf32>
    %50 = arith.cmpf olt, %49, %47 : vector<1x32xf32>
    %51 = arith.select %50, %49, %47 : vector<1x32xi1>, vector<1x32xf32>
    %c1_i32_12 = arith.constant 1 : i32
    %52 = vector.broadcast %c1_i32_12 : i32 to vector<1x32xi32>
    %53 = arith.select %50, %52, %48 : vector<1x32xi1>, vector<1x32xi32>
    %54 = vector.extract_strided_slice %46 {offsets = [2, 0], sizes = [1, 32], strides = [1, 1]} : vector<4x32xf32> to vector<1x32xf32>
    %55 = arith.cmpf olt, %54, %51 : vector<1x32xf32>
    %56 = arith.select %55, %54, %51 : vector<1x32xi1>, vector<1x32xf32>
    %c2_i32_13 = arith.constant 2 : i32
    %57 = vector.broadcast %c2_i32_13 : i32 to vector<1x32xi32>
    %58 = arith.select %55, %57, %53 : vector<1x32xi1>, vector<1x32xi32>
    %59 = vector.extract_strided_slice %46 {offsets = [3, 0], sizes = [1, 32], strides = [1, 1]} : vector<4x32xf32> to vector<1x32xf32>
    %60 = arith.cmpf olt, %59, %56 : vector<1x32xf32>
    %c3_i32_14 = arith.constant 3 : i32
    %61 = vector.broadcast %c3_i32_14 : i32 to vector<1x32xi32>
    %62 = arith.select %60, %61, %58 : vector<1x32xi1>, vector<1x32xi32>
    %63 = vector.broadcast %62 : vector<1x32xi32> to vector<4x32xi32>
    %64 = arith.cmpi eq, %63, %3 : vector<4x32xi32>
    %65 = arith.extui %64 : vector<4x32xi1> to vector<4x32xi32>
    %66 = arith.sitofp %65 : vector<4x32xi32> to vector<4x32xf32>
    %cst_15 = arith.constant dense<0.000000e+00> : vector<4x9xf32>
    %67 = tpu.matmul %66, %2, %cst_15 {dimension_numbers = #tpu.dot_dimension_numbers<[1], [0], [0], [1], [0, 0, 1, 1], [], []>} : vector<4x32xf32>, vector<32x9xf32>, vector<4x9xf32> -> vector<4x9xf32>
    %68 = vector.extract_strided_slice %67 {offsets = [0, 0], sizes = [4, 8], strides = [1, 1]} : vector<4x9xf32> to vector<4x8xf32>
    %69 = vector.extract_strided_slice %67 {offsets = [0, 8], sizes = [4, 1], strides = [1, 1]} : vector<4x9xf32> to vector<4x1xf32>
    %70 = vector.broadcast %69 : vector<4x1xf32> to vector<4x8xf32>
    %71 = arith.divf %68, %70 : vector<4x8xf32>
    %c2_i32_16 = arith.constant 2 : i32
    %72 = arith.mulf %71, %71 : vector<4x8xf32>
    %cst_17 = arith.constant dense<0.000000e+00> : vector<4xf32>
    %73 = vector.multi_reduction <add>, %72, %cst_17 [1] : vector<4x8xf32> to vector<4xf32>
    %74 = vector.shape_cast %73 : vector<4xf32> to vector<4x1xf32>
    %cst_18 = arith.constant -2.000000e+00 : f32
    %75 = vector.broadcast %cst_18 : f32 to vector<4x8xf32>
    %76 = arith.mulf %71, %75 : vector<4x8xf32>
    %cst_19 = arith.constant dense<0.000000e+00> : vector<4x32xf32>
    %77 = tpu.matmul %76, %0, %cst_19 {dimension_numbers = #tpu.dot_dimension_numbers<[1], [1], [0], [0], [0, 0, 1, 0], [], []>} : vector<4x8xf32>, vector<32x8xf32>, vector<4x32xf32> -> vector<4x32xf32>
    %78 = vector.broadcast %74 : vector<4x1xf32> to vector<4x32xf32>
    %79 = arith.addf %77, %78 : vector<4x32xf32>
    %80 = vector.extract_strided_slice %79 {offsets = [0, 0], sizes = [1, 32], strides = [1, 1]} : vector<4x32xf32> to vector<1x32xf32>
    %c0_i32_20 = arith.constant 0 : i32
    %81 = vector.broadcast %c0_i32_20 : i32 to vector<1x32xi32>
    %82 = vector.extract_strided_slice %79 {offsets = [1, 0], sizes = [1, 32], strides = [1, 1]} : vector<4x32xf32> to vector<1x32xf32>
    %83 = arith.cmpf olt, %82, %80 : vector<1x32xf32>
    %84 = arith.select %83, %82, %80 : vector<1x32xi1>, vector<1x32xf32>
    %c1_i32_21 = arith.constant 1 : i32
    %85 = vector.broadcast %c1_i32_21 : i32 to vector<1x32xi32>
    %86 = arith.select %83, %85, %81 : vector<1x32xi1>, vector<1x32xi32>
    %87 = vector.extract_strided_slice %79 {offsets = [2, 0], sizes = [1, 32], strides = [1, 1]} : vector<4x32xf32> to vector<1x32xf32>
    %88 = arith.cmpf olt, %87, %84 : vector<1x32xf32>
    %89 = arith.select %88, %87, %84 : vector<1x32xi1>, vector<1x32xf32>
    %c2_i32_22 = arith.constant 2 : i32
    %90 = vector.broadcast %c2_i32_22 : i32 to vector<1x32xi32>
    %91 = arith.select %88, %90, %86 : vector<1x32xi1>, vector<1x32xi32>
    %92 = vector.extract_strided_slice %79 {offsets = [3, 0], sizes = [1, 32], strides = [1, 1]} : vector<4x32xf32> to vector<1x32xf32>
    %93 = arith.cmpf olt, %92, %89 : vector<1x32xf32>
    %c3_i32_23 = arith.constant 3 : i32
    %94 = vector.broadcast %c3_i32_23 : i32 to vector<1x32xi32>
    %95 = arith.select %93, %94, %91 : vector<1x32xi1>, vector<1x32xi32>
    %96 = vector.broadcast %95 : vector<1x32xi32> to vector<4x32xi32>
    %97 = arith.cmpi eq, %96, %3 : vector<4x32xi32>
    %98 = arith.extui %97 : vector<4x32xi1> to vector<4x32xi32>
    %99 = arith.sitofp %98 : vector<4x32xi32> to vector<4x32xf32>
    %cst_24 = arith.constant dense<0.000000e+00> : vector<4x9xf32>
    %100 = tpu.matmul %99, %2, %cst_24 {dimension_numbers = #tpu.dot_dimension_numbers<[1], [0], [0], [1], [0, 0, 1, 1], [], []>} : vector<4x32xf32>, vector<32x9xf32>, vector<4x9xf32> -> vector<4x9xf32>
    %101 = vector.extract_strided_slice %100 {offsets = [0, 0], sizes = [4, 8], strides = [1, 1]} : vector<4x9xf32> to vector<4x8xf32>
    %102 = vector.extract_strided_slice %100 {offsets = [0, 8], sizes = [4, 1], strides = [1, 1]} : vector<4x9xf32> to vector<4x1xf32>
    %103 = vector.broadcast %102 : vector<4x1xf32> to vector<4x8xf32>
    %104 = arith.divf %101, %103 : vector<4x8xf32>
    %c3_i32_25 = arith.constant 3 : i32
    %105 = arith.mulf %104, %104 : vector<4x8xf32>
    %cst_26 = arith.constant dense<0.000000e+00> : vector<4xf32>
    %106 = vector.multi_reduction <add>, %105, %cst_26 [1] : vector<4x8xf32> to vector<4xf32>
    %107 = vector.shape_cast %106 : vector<4xf32> to vector<4x1xf32>
    %cst_27 = arith.constant -2.000000e+00 : f32
    %108 = vector.broadcast %cst_27 : f32 to vector<4x8xf32>
    %109 = arith.mulf %104, %108 : vector<4x8xf32>
    %cst_28 = arith.constant dense<0.000000e+00> : vector<4x32xf32>
    %110 = tpu.matmul %109, %0, %cst_28 {dimension_numbers = #tpu.dot_dimension_numbers<[1], [1], [0], [0], [0, 0, 1, 0], [], []>} : vector<4x8xf32>, vector<32x8xf32>, vector<4x32xf32> -> vector<4x32xf32>
    %111 = vector.broadcast %107 : vector<4x1xf32> to vector<4x32xf32>
    %112 = arith.addf %110, %111 : vector<4x32xf32>
    %113 = vector.extract_strided_slice %112 {offsets = [0, 0], sizes = [1, 32], strides = [1, 1]} : vector<4x32xf32> to vector<1x32xf32>
    %c0_i32_29 = arith.constant 0 : i32
    %114 = vector.broadcast %c0_i32_29 : i32 to vector<1x32xi32>
    %115 = vector.extract_strided_slice %112 {offsets = [1, 0], sizes = [1, 32], strides = [1, 1]} : vector<4x32xf32> to vector<1x32xf32>
    %116 = arith.cmpf olt, %115, %113 : vector<1x32xf32>
    %117 = arith.select %116, %115, %113 : vector<1x32xi1>, vector<1x32xf32>
    %c1_i32_30 = arith.constant 1 : i32
    %118 = vector.broadcast %c1_i32_30 : i32 to vector<1x32xi32>
    %119 = arith.select %116, %118, %114 : vector<1x32xi1>, vector<1x32xi32>
    %120 = vector.extract_strided_slice %112 {offsets = [2, 0], sizes = [1, 32], strides = [1, 1]} : vector<4x32xf32> to vector<1x32xf32>
    %121 = arith.cmpf olt, %120, %117 : vector<1x32xf32>
    %122 = arith.select %121, %120, %117 : vector<1x32xi1>, vector<1x32xf32>
    %c2_i32_31 = arith.constant 2 : i32
    %123 = vector.broadcast %c2_i32_31 : i32 to vector<1x32xi32>
    %124 = arith.select %121, %123, %119 : vector<1x32xi1>, vector<1x32xi32>
    %125 = vector.extract_strided_slice %112 {offsets = [3, 0], sizes = [1, 32], strides = [1, 1]} : vector<4x32xf32> to vector<1x32xf32>
    %126 = arith.cmpf olt, %125, %122 : vector<1x32xf32>
    %c3_i32_32 = arith.constant 3 : i32
    %127 = vector.broadcast %c3_i32_32 : i32 to vector<1x32xi32>
    %128 = arith.select %126, %127, %124 : vector<1x32xi1>, vector<1x32xi32>
    %129 = vector.broadcast %128 : vector<1x32xi32> to vector<4x32xi32>
    %130 = arith.cmpi eq, %129, %3 : vector<4x32xi32>
    %131 = arith.extui %130 : vector<4x32xi1> to vector<4x32xi32>
    %132 = arith.sitofp %131 : vector<4x32xi32> to vector<4x32xf32>
    %cst_33 = arith.constant dense<0.000000e+00> : vector<4x9xf32>
    %133 = tpu.matmul %132, %2, %cst_33 {dimension_numbers = #tpu.dot_dimension_numbers<[1], [0], [0], [1], [0, 0, 1, 1], [], []>} : vector<4x32xf32>, vector<32x9xf32>, vector<4x9xf32> -> vector<4x9xf32>
    %134 = vector.extract_strided_slice %133 {offsets = [0, 0], sizes = [4, 8], strides = [1, 1]} : vector<4x9xf32> to vector<4x8xf32>
    %135 = vector.extract_strided_slice %133 {offsets = [0, 8], sizes = [4, 1], strides = [1, 1]} : vector<4x9xf32> to vector<4x1xf32>
    %136 = vector.broadcast %135 : vector<4x1xf32> to vector<4x8xf32>
    %137 = arith.divf %134, %136 : vector<4x8xf32>
    %c4_i32 = arith.constant 4 : i32
    %138 = arith.mulf %137, %137 : vector<4x8xf32>
    %cst_34 = arith.constant dense<0.000000e+00> : vector<4xf32>
    %139 = vector.multi_reduction <add>, %138, %cst_34 [1] : vector<4x8xf32> to vector<4xf32>
    %140 = vector.shape_cast %139 : vector<4xf32> to vector<4x1xf32>
    %cst_35 = arith.constant -2.000000e+00 : f32
    %141 = vector.broadcast %cst_35 : f32 to vector<4x8xf32>
    %142 = arith.mulf %137, %141 : vector<4x8xf32>
    %cst_36 = arith.constant dense<0.000000e+00> : vector<4x32xf32>
    %143 = tpu.matmul %142, %0, %cst_36 {dimension_numbers = #tpu.dot_dimension_numbers<[1], [1], [0], [0], [0, 0, 1, 0], [], []>} : vector<4x8xf32>, vector<32x8xf32>, vector<4x32xf32> -> vector<4x32xf32>
    %144 = vector.broadcast %140 : vector<4x1xf32> to vector<4x32xf32>
    %145 = arith.addf %143, %144 : vector<4x32xf32>
    %146 = vector.extract_strided_slice %145 {offsets = [0, 0], sizes = [1, 32], strides = [1, 1]} : vector<4x32xf32> to vector<1x32xf32>
    %c0_i32_37 = arith.constant 0 : i32
    %147 = vector.broadcast %c0_i32_37 : i32 to vector<1x32xi32>
    %148 = vector.extract_strided_slice %145 {offsets = [1, 0], sizes = [1, 32], strides = [1, 1]} : vector<4x32xf32> to vector<1x32xf32>
    %149 = arith.cmpf olt, %148, %146 : vector<1x32xf32>
    %150 = arith.select %149, %148, %146 : vector<1x32xi1>, vector<1x32xf32>
    %c1_i32_38 = arith.constant 1 : i32
    %151 = vector.broadcast %c1_i32_38 : i32 to vector<1x32xi32>
    %152 = arith.select %149, %151, %147 : vector<1x32xi1>, vector<1x32xi32>
    %153 = vector.extract_strided_slice %145 {offsets = [2, 0], sizes = [1, 32], strides = [1, 1]} : vector<4x32xf32> to vector<1x32xf32>
    %154 = arith.cmpf olt, %153, %150 : vector<1x32xf32>
    %155 = arith.select %154, %153, %150 : vector<1x32xi1>, vector<1x32xf32>
    %c2_i32_39 = arith.constant 2 : i32
    %156 = vector.broadcast %c2_i32_39 : i32 to vector<1x32xi32>
    %157 = arith.select %154, %156, %152 : vector<1x32xi1>, vector<1x32xi32>
    %158 = vector.extract_strided_slice %145 {offsets = [3, 0], sizes = [1, 32], strides = [1, 1]} : vector<4x32xf32> to vector<1x32xf32>
    %159 = arith.cmpf olt, %158, %155 : vector<1x32xf32>
    %c3_i32_40 = arith.constant 3 : i32
    %160 = vector.broadcast %c3_i32_40 : i32 to vector<1x32xi32>
    %161 = arith.select %159, %160, %157 : vector<1x32xi1>, vector<1x32xi32>
    %162 = vector.broadcast %161 : vector<1x32xi32> to vector<4x32xi32>
    %163 = arith.cmpi eq, %162, %3 : vector<4x32xi32>
    %164 = arith.extui %163 : vector<4x32xi1> to vector<4x32xi32>
    %165 = arith.sitofp %164 : vector<4x32xi32> to vector<4x32xf32>
    %cst_41 = arith.constant dense<0.000000e+00> : vector<4x9xf32>
    %166 = tpu.matmul %165, %2, %cst_41 {dimension_numbers = #tpu.dot_dimension_numbers<[1], [0], [0], [1], [0, 0, 1, 1], [], []>} : vector<4x32xf32>, vector<32x9xf32>, vector<4x9xf32> -> vector<4x9xf32>
    %167 = vector.extract_strided_slice %166 {offsets = [0, 0], sizes = [4, 8], strides = [1, 1]} : vector<4x9xf32> to vector<4x8xf32>
    %168 = vector.extract_strided_slice %166 {offsets = [0, 8], sizes = [4, 1], strides = [1, 1]} : vector<4x9xf32> to vector<4x1xf32>
    %169 = vector.broadcast %168 : vector<4x1xf32> to vector<4x8xf32>
    %170 = arith.divf %167, %169 : vector<4x8xf32>
    %c0_42 = arith.constant 0 : index
    %c0_43 = arith.constant 0 : index
    %171 = vector.load %arg1[%c0_42, %c0_43] : memref<1x32xi32, #tpu.memory_space<vmem>>, vector<1x32xi32>
    tpu.vector_store %arg1[%c0_42, %c0_43], %161 {strides = array<i32>} : memref<1x32xi32, #tpu.memory_space<vmem>>, vector<1x32xi32>,
    return
  }
}

</mosaic_0001>

<bundles_post_ra>
// kernel: tpu_custom_call.1
= control target key start
LH: loop header
LB: loop body
LE: loop exit
PB: predicated region body
PF: predicated region fallthrough
CT: control target
= control target key end

     0   :  { %vm13_vm0 = vcmask 64512   ;;  %v1097_v1 = vmov 0.0   ;;  %vm1098_vm1 = vmmov 0   ;;  %vm21_vm2 = vcmask 60416   ;;  %s1300_s0 = inlined_call_operand.vmem [shape: f32[32,8], index: 0, kind: input, shape index: {}]   ;;  %s1301_s1 = inlined_call_operand.hbm [shape: s32[1,32], index: 1, kind: output, shape index: {}]  }
   0x1   :  { %v1115_v0 = vld [vmem:[%s1300_s0 + $0x18] sm:$0xff]  ;;  %961 = vmatprep.subr.mxu0 %v1097_v1  ;;  %v1121_v2 = vld [vmem:[%s1300_s0] sm:$0xff]  ;;  %969 = vmatprep.mubr.msk.f32.mxu0 %vm1098_vm1, %v1097_v1 }
   0x2   :  { %6 = vsyncpa [#allocation3], 0  ;;  %962 = vmatpush3.xpose.msk.msra.mxu0 %vm13_vm0, %v1115_v0  ;;  %v20_v3 = vmul.f32 %v1121_v2, %v1121_v2  ;;  %972 = vmatprep.subr.mxu1 %v1097_v1  ;;  %v1134_v4 = vld [vmem:[%s1300_s0 + $0x10] sm:$0xff]  ;;  %v1145_v6 = vld [vmem:[%s1300_s0 + $0x8] sm:$0xff]  ;;  %v25_v7 = vmul.f32 -2.0, %v1121_v2  ;;  %v1171_v8 = vsel %vm13_vm0, %v1115_v0, 1.0  ;;  %v18_v17 = vlaneseq }
   0x3   :  { %963 = vmatprep.subr.mxu0 %v1097_v1  ;;  %980 = vmatprep.mubr.msk.f32.mxu1 %vm1098_vm1, %v1097_v1  ;;  %v1175_v9 = vsel %vm13_vm0, %v1134_v4, 1.0  ;;  %v1181_v10 = vsel %vm13_vm0, %v1145_v6, 1.0  ;;  %v1187_v11 = vsel %vm13_vm0, %v1121_v2, 1.0  ;;  %v1099_v12 = vmov 8   ;;  %s1101_s0 = smov [#allocation2]  }
   0x4   :  { %v22_v5 = vsel %vm21_vm2, %v20_v3, 0.0  ;;  %973 = vmatpush3.msra.mxu1 %v1171_v8  ;;  %1065 = vset.pattern.permute.xlu0 %v1099_v12  ;;  %v1100_v20 = vmov 0   ;;  %v1194_v22 = vshrl.u32 %v18_v17, 7  ;;  %vm137_vm6 = vcmask 261120   ;;  %s875_s14 = sshll.u32 %s1101_s0, 4  ;;  %s876_s14 = int_to_ptr.vmem [resolvable:$true] %s875_s14 }
   0x5   :  { %23 = vadd.xlane.f32.xlu0 %v22_v5  ;;  %974 = vmatprep.subr.mxu1 %v1097_v1  ;;  %s1075_s15 = scalar_lea.vmem %s876_s14, 16  ;;  %s1079_s16 = scalar_lea.vmem %s876_s14, 32 }
   0x6   :  { %964 = vmatpush3.xpose.msk.msra.mxu0 %vm13_vm0, %v1134_v4  ;;  %975 = vmatpush3.msra.mxu1 %v1175_v9  ;;  %v1197_v29 = vsub.s32 3, %v1194_v22  ;;  %p1076_p0 = scmp.ne.s32.totalorder %s876_s14, %s1075_s15  ;;  %p1080_p1 = scmp.lt.s32.totalorder %s876_s14, %s876_s14 }
   0x7   :  { %965 = vmatprep.subr.mxu0 %v1097_v1  ;;  %976 = vmatprep.subr.mxu1 %v1097_v1  ;;  %p1081_p2 = scmp.lt.s32.totalorder %s1079_s16, %s1075_s15 }
   0x8   :  { %977 = vmatpush3.msra.mxu1 %v1181_v10  ;;  %1066 = vset.pattern.permute.xlu1 %v1099_v12 }
   0x9   :  { %978 = vmatprep.subr.mxu1 %v1097_v1  ;;  %p1082_p3 = por %p1081_p2, %p1080_p1 }
   0xa   :  { %966 = vmatpush3.xpose.msk.msra.mxu0 %vm13_vm0, %v1145_v6  ;;  %979 = vmatpush3.msra.mxu1 %v1187_v11 }
   0xb   :  { %967 = vmatprep.subr.mxu0 %v1097_v1  ;;  %983 = vmatprep.subr.mxu1 %v1097_v1  ;;  %p1083_p4 = pnand %p1082_p3, %p1076_p0 }
   0xe   :  { %968 = vmatpush3.xpose.msk.msra.mxu0 %vm13_vm0, %v1121_v2 }
   0xf   :  { %1005 = vmatprep.subr.mxu0 %v1097_v1 }
  0x11   :  { %970 = vmatmul.mubr.msk.f32.vlgmr.msra.gmra.mxu0 %vm13_vm0, %v25_v7 }
  0x12   :  { %1006 = vmatpush3.xpose.msk.msra.mxu0 %vm13_vm0, %v1115_v0  ;;  %1013 = vmatprep.mubr.msk.f32.mxu0 %vm1098_vm1, %v1097_v1 }
  0x13   :  { %1007 = vmatprep.subr.mxu0 %v1097_v1 }
  0x16   :  { %1008 = vmatpush3.xpose.msk.msra.mxu0 %vm13_vm0, %v1134_v4 }
  0x17   :  { %1009 = vmatprep.subr.mxu0 %v1097_v1 }
  0x1a   :  { %1010 = vmatpush3.xpose.msk.msra.mxu0 %vm13_vm0, %v1145_v6 }
  0x1b   :  { %1011 = vmatprep.subr.mxu0 %v1097_v1 }
  0x1e   :  { %1012 = vmatpush3.xpose.msk.msra.mxu0 %vm13_vm0, %v1121_v2 }
  0x1f   :  { %1038 = vmatprep.subr.mxu0 %v1097_v1 }
  0x8e   :  { %v24_v13 = vpop.xlane.xlu0 %23 }
  0xd1   :  { %v107_v14 = vpop.f32.mrf.mxu0 }
  0xd2   :  { %v108_v15 = vadd.f32 %v107_v14, %v24_v13 }
  0xd3   :  { %v971_v16 = vpop.f32.mrf.mxu0 }
  0xd4   :  { %v112_v18 = vrot.slane %v108_v15, 7 }
  0xd6   :  { %vm114_vm3 = vcmp.lt.f32.partialorder %v108_v15, %v112_v18 }
  0xd7   :  { %v115_v19 = vsel %vm114_vm3, %v108_v15, %v112_v18  ;;  %v116_v21 = vsel %vm114_vm3, 1, %v1100_v20 }
  0xd8   :  { %v118_v23 = vrot.slane %v115_v19, 7  ;;  %v122_v24 = vrot.slane %v116_v21, 7 }
  0xda   :  { %vm120_vm4 = vcmp.lt.f32.partialorder %v108_v15, %v118_v23 }
  0xdb   :  { %v121_v25 = vsel %vm120_vm4, %v108_v15, %v118_v23  ;;  %v123_v26 = vsel %vm120_vm4, 2, %v122_v24 }
  0xdc   :  { %v125_v27 = vrot.slane %v121_v25, 7  ;;  %v128_v28 = vrot.slane %v123_v26, 7 }
  0xde   :  { %vm127_vm5 = vcmp.lt.f32.partialorder %v108_v15, %v125_v27 }
  0xdf   :  { %v129_v30 = vsel %vm127_vm5, 3, %v128_v28 }
  0xe0   :  { %v133_v31 = vrot.slane %v129_v30, %v1197_v29 }
  0xe2   :  { %vm134_vm7 = vcmp.eq.s32.totalorder %v133_v31, %v1194_v22 }
  0xe3   :  { %v888_v32 = vsel %vm134_vm7, 1.0, %v1097_v1 }
  0xe4   :  { %981 = vmatmul.mubr.msk.f32.vlgmr.msra.gmra.mxu1 %vm137_vm6, %v888_v32 }
  0xe5   :  { %984 = vmatpush3.xpose.msk.msra.mxu1 %vm13_vm0, %v1115_v0  ;;  %991 = vmatprep.mubr.msk.f32.mxu1 %vm1098_vm1, %v1097_v1 }
  0xe6   :  { %985 = vmatprep.subr.mxu1 %v1097_v1 }
  0xe9   :  { %986 = vmatpush3.xpose.msk.msra.mxu1 %vm13_vm0, %v1134_v4 }
  0xea   :  { %987 = vmatprep.subr.mxu1 %v1097_v1 }
  0xed   :  { %988 = vmatpush3.xpose.msk.msra.mxu1 %vm13_vm0, %v1145_v6 }
  0xee   :  { %989 = vmatprep.subr.mxu1 %v1097_v1 }
  0xf1   :  { %990 = vmatpush3.xpose.msk.msra.mxu1 %vm13_vm0, %v1121_v2 }
  0xf2   :  { %994 = vmatprep.subr.mxu1 %v1097_v1 }
 0x1a4   :  { %v207_v33 = vpop.f32.mrf.mxu1 }
 0x1a5   :  { %213 = vperm.xlu0 %1065, %v207_v33  }
 0x1a6   :  { %v982_v34 = vpop.f32.mrf.mxu1 }
 0x220   :  { %v214_v35 = vpop.permute.xlu0 %213 }
 0x221   :  { %1067 = vrcp.f32 %v214_v35 }
 0x22e   :  { %v1068_v36 = vpop.eup %1067 }
 0x22f   :  { %v217_v37 = vmul.f32 %v1068_v36, %v207_v33 }
 0x231   :  { %v222_v38 = vmul.f32 -2.0, %v217_v37  ;;  %v218_v39 = vmul.f32 %v217_v37, %v217_v37 }
 0x233   :  { %992 = vmatmul.mubr.msk.f32.vlgmr.msra.gmra.mxu1 %vm13_vm0, %v222_v38  ;;  %v219_v40 = vsel %vm21_vm2, %v218_v39, 0.0 }
 0x234   :  { %220 = vadd.xlane.f32.xlu1 %v219_v40  ;;  %995 = vmatpush3.msra.mxu1 %v1171_v8 }
 0x235   :  { %996 = vmatprep.subr.mxu1 %v1097_v1  ;;  %1002 = vmatprep.mubr.msk.f32.mxu1 %vm1098_vm1, %v1097_v1 }
 0x236   :  { %997 = vmatpush3.msra.mxu1 %v1175_v9 }
 0x237   :  { %998 = vmatprep.subr.mxu1 %v1097_v1 }
 0x238   :  { %999 = vmatpush3.msra.mxu1 %v1181_v10 }
 0x239   :  { %1000 = vmatprep.subr.mxu1 %v1097_v1 }
 0x23a   :  { %1001 = vmatpush3.msra.mxu1 %v1187_v11 }
 0x23b   :  { %1016 = vmatprep.subr.mxu1 %v1097_v1 }
 0x2bd   :  { %v221_v41 = vpop.xlane.xlu1 %220 }
 0x2f3   :  { %v292_v42 = vpop.f32.mrf.mxu1 }
 0x2f4   :  { %v293_v43 = vadd.f32 %v292_v42, %v221_v41 }
 0x2f5   :  { %v993_v44 = vpop.f32.mrf.mxu1 }
 0x2f6   :  { %v297_v45 = vrot.slane %v293_v43, 7 }
 0x2f8   :  { %vm299_vm8 = vcmp.lt.f32.partialorder %v293_v43, %v297_v45 }
 0x2f9   :  { %v300_v46 = vsel %vm299_vm8, %v293_v43, %v297_v45  ;;  %v301_v47 = vsel %vm299_vm8, 1, %v1100_v20 }
 0x2fa   :  { %v303_v48 = vrot.slane %v300_v46, 7  ;;  %v307_v49 = vrot.slane %v301_v47, 7 }
 0x2fc   :  { %vm305_vm9 = vcmp.lt.f32.partialorder %v293_v43, %v303_v48 }
 0x2fd   :  { %v306_v50 = vsel %vm305_vm9, %v293_v43, %v303_v48  ;;  %v308_v51 = vsel %vm305_vm9, 2, %v307_v49 }
 0x2fe   :  { %v310_v52 = vrot.slane %v306_v50, 7  ;;  %v313_v53 = vrot.slane %v308_v51, 7 }
 0x300   :  { %vm312_vm10 = vcmp.lt.f32.partialorder %v293_v43, %v310_v52 }
 0x301   :  { %v314_v54 = vsel %vm312_vm10, 3, %v313_v53 }
 0x302   :  { %v318_v55 = vrot.slane %v314_v54, %v1197_v29 }
 0x304   :  { %vm319_vm11 = vcmp.eq.s32.totalorder %v318_v55, %v1194_v22 }
 0x305   :  { %v895_v56 = vsel %vm319_vm11, 1.0, %v1097_v1 }
 0x306   :  { %1003 = vmatmul.mubr.msk.f32.vlgmr.msra.gmra.mxu1 %vm137_vm6, %v895_v56 }
 0x307   :  { %1017 = vmatpush3.msra.mxu1 %v1171_v8  ;;  %1024 = vmatprep.mubr.msk.f32.mxu1 %vm1098_vm1, %v1097_v1 }
 0x308   :  { %1018 = vmatprep.subr.mxu1 %v1097_v1 }
 0x309   :  { %1019 = vmatpush3.msra.mxu1 %v1175_v9 }
 0x30a   :  { %1020 = vmatprep.subr.mxu1 %v1097_v1 }
 0x30b   :  { %1021 = vmatpush3.msra.mxu1 %v1181_v10 }
 0x30c   :  { %1022 = vmatprep.subr.mxu1 %v1097_v1 }
 0x30d   :  { %1023 = vmatpush3.msra.mxu1 %v1187_v11 }
 0x30e   :  { %1027 = vmatprep.subr.mxu1 %v1097_v1 }
 0x3c6   :  { %v391_v57 = vpop.f32.mrf.mxu1 }
 0x3c7   :  { %397 = vperm.xlu1 %1066, %v391_v57  }
 0x3c8   :  { %v1004_v58 = vpop.f32.mrf.mxu1 }
 0x442   :  { %v398_v59 = vpop.permute.xlu1 %397 }
 0x443   :  { %1069 = vrcp.f32 %v398_v59 }
 0x450   :  { %v1070_v60 = vpop.eup %1069 }
 0x451   :  { %v401_v61 = vmul.f32 %v1070_v60, %v391_v57 }
 0x453   :  { %v406_v62 = vmul.f32 -2.0, %v401_v61  ;;  %v402_v63 = vmul.f32 %v401_v61, %v401_v61 }
 0x455   :  { %1014 = vmatmul.mubr.msk.f32.vlgmr.msra.gmra.mxu0 %vm13_vm0, %v406_v62  ;;  %v403_v3 = vsel %vm21_vm2, %v402_v63, 0.0 }
 0x456   :  { %404 = vadd.xlane.f32.xlu1 %v403_v3  ;;  %1039 = vmatpush3.msra.mxu0 %v1171_v8 }
 0x457   :  { %1040 = vmatprep.subr.mxu0 %v1097_v1  ;;  %1046 = vmatprep.mubr.msk.f32.mxu0 %vm1098_vm1, %v1097_v1 }
 0x458   :  { %1041 = vmatpush3.msra.mxu0 %v1175_v9 }
 0x459   :  { %1042 = vmatprep.subr.mxu0 %v1097_v1 }
 0x45a   :  { %1043 = vmatpush3.msra.mxu0 %v1181_v10 }
 0x45b   :  { %1044 = vmatprep.subr.mxu0 %v1097_v1 }
 0x45c   :  { %1045 = vmatpush3.msra.mxu0 %v1187_v11 }
 0x45d   :  { %1049 = vmatprep.subr.mxu0 %v1097_v1 }
 0x4df   :  { %v405_v5 = vpop.xlane.xlu1 %404 }
 0x515   :  { %v476_v7 = vpop.f32.mrf.mxu0 }
 0x516   :  { %v477_v8 = vadd.f32 %v476_v7, %v405_v5 }
 0x517   :  { %v1015_v12 = vpop.f32.mrf.mxu0 }
 0x518   :  { %v481_v13 = vrot.slane %v477_v8, 7 }
 0x51a   :  { %vm483_vm12 = vcmp.lt.f32.partialorder %v477_v8, %v481_v13 }
 0x51b   :  { %v484_v14 = vsel %vm483_vm12, %v477_v8, %v481_v13  ;;  %v485_v15 = vsel %vm483_vm12, 1, %v1100_v20 }
 0x51c   :  { %v487_v9 = vrot.slane %v484_v14, 7  ;;  %v491_v16 = vrot.slane %v485_v15, 7 }
 0x51e   :  { %vm489_vm13 = vcmp.lt.f32.partialorder %v477_v8, %v487_v9 }
 0x51f   :  { %v490_v17 = vsel %vm489_vm13, %v477_v8, %v487_v9  ;;  %v492_v10 = vsel %vm489_vm13, 2, %v491_v16 }
 0x520   :  { %v494_v18 = vrot.slane %v490_v17, 7  ;;  %v497_v19 = vrot.slane %v492_v10, 7 }
 0x522   :  { %vm496_vm14 = vcmp.lt.f32.partialorder %v477_v8, %v494_v18 }
 0x523   :  { %v498_v11 = vsel %vm496_vm14, 3, %v497_v19 }
 0x524   :  { %v502_v21 = vrot.slane %v498_v11, %v1197_v29 }
 0x526   :  { %vm503_vm15 = vcmp.eq.s32.totalorder %v502_v21, %v1194_v22 }
 0x527   :  { %v902_v23 = vsel %vm503_vm15, 1.0, %v1097_v1 }
 0x528   :  { %1025 = vmatmul.mubr.msk.f32.vlgmr.msra.gmra.mxu1 %vm137_vm6, %v902_v23 }
 0x529   :  { %1028 = vmatpush3.xpose.msk.msra.mxu1 %vm13_vm0, %v1115_v0  ;;  %1035 = vmatprep.mubr.msk.f32.mxu1 %vm1098_vm1, %v1097_v1 }
 0x52a   :  { %1029 = vmatprep.subr.mxu1 %v1097_v1 }
 0x52d   :  { %1030 = vmatpush3.xpose.msk.msra.mxu1 %vm13_vm0, %v1134_v4 }
 0x52e   :  { %1031 = vmatprep.subr.mxu1 %v1097_v1 }
 0x531   :  { %1032 = vmatpush3.xpose.msk.msra.mxu1 %vm13_vm0, %v1145_v6 }
 0x532   :  { %1033 = vmatprep.subr.mxu1 %v1097_v1 }
 0x535   :  { %1034 = vmatpush3.xpose.msk.msra.mxu1 %vm13_vm0, %v1121_v2 }
 0x5e8   :  { %v575_v24 = vpop.f32.mrf.mxu1 }
 0x5e9   :  { %581 = vperm.xlu0 %1065, %v575_v24  }
 0x5ea   :  { %v1026_v25 = vpop.f32.mrf.mxu1 }
 0x664   :  { %v582_v26 = vpop.permute.xlu0 %581 }
 0x665   :  { %1071 = vrcp.f32 %v582_v26 }
 0x672   :  { %v1072_v27 = vpop.eup %1071 }
 0x673   :  { %v585_v28 = vmul.f32 %v1072_v27, %v575_v24 }
 0x675   :  { %v590_v30 = vmul.f32 -2.0, %v585_v28  ;;  %v586_v31 = vmul.f32 %v585_v28, %v585_v28 }
 0x677   :  { %1036 = vmatmul.mubr.msk.f32.vlgmr.msra.gmra.mxu1 %vm13_vm0, %v590_v30  ;;  %v587_v32 = vsel %vm21_vm2, %v586_v31, 0.0 }
 0x678   :  { %588 = vadd.xlane.f32.xlu0 %v587_v32 }
 0x701   :  { %v589_v33 = vpop.xlane.xlu0 %588 }
 0x737   :  { %v660_v34 = vpop.f32.mrf.mxu1 }
 0x738   :  { %v661_v35 = vadd.f32 %v660_v34, %v589_v33 }
 0x739   :  { %v1037_v36 = vpop.f32.mrf.mxu1 }
 0x73a   :  { %v665_v37 = vrot.slane %v661_v35, 7 }
 0x73c   :  { %vm667_vm3 = vcmp.lt.f32.partialorder %v661_v35, %v665_v37 }
 0x73d   :  { %v668_v38 = vsel %vm667_vm3, %v661_v35, %v665_v37  ;;  %v669_v39 = vsel %vm667_vm3, 1, %v1100_v20 }
 0x73e   :  { %v671_v40 = vrot.slane %v668_v38, 7  ;;  %v675_v41 = vrot.slane %v669_v39, 7 }
 0x740   :  { %vm673_vm4 = vcmp.lt.f32.partialorder %v661_v35, %v671_v40 }
 0x741   :  { %v674_v42 = vsel %vm673_vm4, %v661_v35, %v671_v40  ;;  %v676_v43 = vsel %vm673_vm4, 2, %v675_v41 }
 0x742   :  { %v678_v44 = vrot.slane %v674_v42, 7  ;;  %v681_v45 = vrot.slane %v676_v43, 7 }
 0x744   :  { %vm680_vm5 = vcmp.lt.f32.partialorder %v661_v35, %v678_v44 }
 0x745   :  { %v682_v46 = vsel %vm680_vm5, 3, %v681_v45 }
 0x746   :  { %v686_v47 = vrot.slane %v682_v46, %v1197_v29 }
 0x748   :  { %vm687_vm7 = vcmp.eq.s32.totalorder %v686_v47, %v1194_v22 }
 0x749   :  { %v909_v48 = vsel %vm687_vm7, 1.0, %v1097_v1 }
 0x74a   :  { %1047 = vmatmul.mubr.msk.f32.vlgmr.msra.gmra.mxu0 %vm137_vm6, %v909_v48 }
 0x74b   :  { %1050 = vmatpush3.xpose.msk.msra.mxu0 %vm13_vm0, %v1115_v0  ;;  %1057 = vmatprep.mubr.msk.f32.mxu0 %vm1098_vm1, %v1097_v1 }
 0x74c   :  { %1051 = vmatprep.subr.mxu0 %v1097_v1 }
 0x74f   :  { %1052 = vmatpush3.xpose.msk.msra.mxu0 %vm13_vm0, %v1134_v4 }
 0x750   :  { %1053 = vmatprep.subr.mxu0 %v1097_v1 }
 0x753   :  { %1054 = vmatpush3.xpose.msk.msra.mxu0 %vm13_vm0, %v1145_v6 }
 0x754   :  { %1055 = vmatprep.subr.mxu0 %v1097_v1 }
 0x757   :  { %1056 = vmatpush3.xpose.msk.msra.mxu0 %vm13_vm0, %v1121_v2 }
 0x80a   :  { %v759_v22 = vpop.f32.mrf.mxu0 }
 0x80b   :  { %765 = vperm.xlu1 %1066, %v759_v22  }
 0x80c   :  { %v1048_v0 = vpop.f32.mrf.mxu0 }
 0x886   :  { %v766_v29 = vpop.permute.xlu1 %765 }
 0x887   :  { %1073 = vrcp.f32 %v766_v29 }
 0x894   :  { %v1074_v49 = vpop.eup %1073 }
 0x895   :  { %v769_v50 = vmul.f32 %v1074_v49, %v759_v22 }
 0x897   :  { %v774_v51 = vmul.f32 -2.0, %v769_v50  ;;  %v770_v52 = vmul.f32 %v769_v50, %v769_v50 }
 0x899   :  { %1058 = vmatmul.mubr.msk.f32.vlgmr.msra.gmra.mxu0 %vm13_vm0, %v774_v51  ;;  %v771_v4 = vsel %vm21_vm2, %v770_v52, 0.0  ;;  %vm867_vm0 = vcmask 257027  }
 0x89a   :  { %772 = vadd.xlane.f32.xlu1 %v771_v4 }
 0x923   :  { %v773_v6 = vpop.xlane.xlu1 %772 }
 0x959   :  { %v844_v53 = vpop.f32.mrf.mxu0 }
 0x95a   :  { %v845_v1 = vadd.f32 %v844_v53, %v773_v6 }
 0x95b   :  { %v1059_v54 = vpop.f32.mrf.mxu0 }
 0x95c   :  { %v849_v55 = vrot.slane %v845_v1, 7 }
 0x95e   :  { %vm851_vm1 = vcmp.lt.f32.partialorder %v845_v1, %v849_v55 }
 0x95f   :  { %v852_v2 = vsel %vm851_vm1, %v845_v1, %v849_v55  ;;  %v853_v56 = vsel %vm851_vm1, 1, %v1100_v20 }
 0x960   :  { %v855_v57 = vrot.slane %v852_v2, 7  ;;  %v859_v58 = vrot.slane %v853_v56, 7 }
 0x962   :  { %vm857_vm6 = vcmp.lt.f32.partialorder %v845_v1, %v855_v57 }
 0x963   :  { %v858_v59 = vsel %vm857_vm6, %v845_v1, %v855_v57  ;;  %v860_v60 = vsel %vm857_vm6, 2, %v859_v58 }
 0x964   :  { %v862_v61 = vrot.slane %v858_v59, 7  ;;  %v865_v62 = vrot.slane %v860_v60, 7 }
 0x966   :  { %vm864_vm2 = vcmp.lt.f32.partialorder %v845_v1, %v862_v61 }
 0x967   :  { %v866_v63 = vsel %vm864_vm2, 3, %v865_v62 }
 0x968   :  { %868 = vst.msk [vmem:[#allocation2 - $0x3] sm:$0x8] %vm867_vm0, %v866_v63 }
 0x969   :  { %1086 = shalt.err (!%p1083_p4)
}
 0x96a   :  { %878 = dma.vmem_to_hbm [thread:$0]  %s876_s14, 16, %s1301_s1, [#allocation3]  }
 0x96b   :  { %1095 = dma.done.wait [#allocation3], 16  }
 0x96c   :  { %1096 = vsyncadd [#allocation3], 4294967280 }
 0x96d   :  { %882 = vsyncpa [#allocation3], 1 }

</bundles_post_ra>
